<compile_context>
chip_gen: v7x
topology: tpu7x:2x2x1
jax: 0.10.0
libtpu: 0.0.40
codegen_flags: <defaults>
</compile_context>

<pallas_src>
import functools

import jax
import jax.numpy as jnp
from jax import lax
from jax.experimental import pallas as pl
from jax.experimental.pallas import tpu as pltpu


_VMEM_LIMIT_BYTES = 32 * 1024 * 1024     # safe on v5e/v6e (128 MiB) and v7x (64 MiB)
_BLOCK_VMEM_BUDGET = 8 * 1024 * 1024     # what the per-step blocks/intermediates may use


def _choose_b_tile(batch, graph, embed, hidden, itemsize):
    """Samples per grid step: as large as the VMEM budget allows, but keep
    >= 2 grid steps so v7x's two TensorCores both get work on the parallel
    batch axis (on v5e/v6e the grid is a serial loop, so the cap is harmless)."""
    per_sample = (
        2 * 2 * graph * embed * itemsize          # x + out blocks, double-buffered
        + 4 * graph * (hidden + 2 * embed))       # f32 intermediates h, y/centered
    b_tile = max(1, _BLOCK_VMEM_BUDGET // per_sample)
    if batch >= 2:
        b_tile = min(b_tile, max(1, batch // 2))
    return int(min(b_tile, batch))


def _ff_norm_kernel(x_ref, w1_ref, b1_ref, w2_ref, b2_ref, o_ref, *,
                    eps, inv_nm1):
    # x_ref : (B_TILE, graph, embed)  current batch tile
    # w1_ref: (embed, hidden)   Linear1 weight, pre-transposed (in, out)
    # b1_ref: (1, hidden)
    # w2_ref: (hidden, embed)   Linear2 weight, pre-transposed (in, out)
    # b2_ref: (1, embed)
    # o_ref : (B_TILE, graph, embed)
    bt, g, d = x_ref.shape

    # Flatten the batch tile into one (B_TILE*graph, embed) slab so each layer
    # is a single 2-D MXU dot (one MXU push/drain per layer per grid step).
    x = x_ref[...].reshape(bt * g, d).astype(jnp.float32)

    h = jnp.dot(x, w1_ref[...], preferred_element_type=jnp.float32)
    h = jnp.maximum(h + b1_ref[...], 0.0)                        # (bt*g, H)
    y = jnp.dot(h, w2_ref[...], preferred_element_type=jnp.float32)
    y = y + b2_ref[...] + x                                      # residual, (bt*g, D)

    # Per-sample 'layer' normalization over all (graph, embed) elements with
    # unbiased variance (matches torch.var default). Sequential single-axis
    # reductions keep the Mosaic lowering simple; shapes stay keepdims.
    y3 = y.reshape(bt, g, d)
    mean = jnp.mean(jnp.mean(y3, axis=2, keepdims=True), axis=1, keepdims=True)
    centered = y3 - mean
    ssq = jnp.sum(jnp.sum(centered * centered, axis=2, keepdims=True),
                  axis=1, keepdims=True)
    inv_std = lax.rsqrt(ssq * inv_nm1 + eps)                     # (bt,1,1), EUP
    o_ref[...] = (centered * inv_std).astype(o_ref.dtype)


def ff_and_norm(x, w1, b1, w2, b2, *, eps=1e-5):
    """Pallas implementation of FFandNormsubLayer.forward ('layer' norm path).

    x : (batch, graph, embed)
    w1: (embed, hidden)   == torch Linear1.weight.T
    b1: (hidden,)
    w2: (hidden, embed)   == torch Linear2.weight.T
    b2: (embed,)
    """
    batch, graph, embed = x.shape
    hidden = w1.shape[1]

    b1_2d = b1.reshape(1, hidden)
    b2_2d = b2.reshape(1, embed)

    n_elem = graph * embed
    # Note: graph*embed == 1 gives 1/(N-1) division by zero — this mirrors
    # torch.var(ddof=1) producing NaN there, so no guard on purpose.
    kernel = functools.partial(_ff_norm_kernel, eps=eps,
                               inv_nm1=1.0 / (n_elem - 1))

    b_tile = _choose_b_tile(batch, graph, embed, hidden, x.dtype.itemsize)
    n_steps = pl.cdiv(batch, b_tile)
    batch_pad = n_steps * b_tile

    x_in = x
    if batch_pad != batch:
        # Padded samples are per-sample independent (normalization cannot leak
        # between samples); the padded output rows are sliced off below.
        x_in = jnp.pad(x, ((0, batch_pad - batch), (0, 0), (0, 0)))

    cost = pl.CostEstimate(
        flops=4 * batch_pad * graph * embed * hidden
              + 10 * batch_pad * graph * embed,
        transcendentals=batch_pad,                   # one rsqrt per sample
        bytes_accessed=(2 * batch_pad * graph * embed
                        + w1.size + w2.size + b1.size + b2.size)
                       * x.dtype.itemsize,
    )

    def run(single_buffer_weights):
        # Grid-invariant operands (constant index_map): single-buffer them so
        # the pipeline does not waste VMEM rotating identical copies.
        wkw = dict(pipeline_mode=pl.Buffered(1)) if single_buffer_weights else {}
        return pl.pallas_call(
            kernel,
            out_shape=jax.ShapeDtypeStruct((batch_pad, graph, embed), x.dtype),
            grid=(n_steps,),
            in_specs=[
                pl.BlockSpec((b_tile, graph, embed), lambda b: (b, 0, 0)),
                pl.BlockSpec((embed, hidden), lambda b: (0, 0), **wkw),
                pl.BlockSpec((1, hidden), lambda b: (0, 0), **wkw),
                pl.BlockSpec((hidden, embed), lambda b: (0, 0), **wkw),
                pl.BlockSpec((1, embed), lambda b: (0, 0), **wkw),
            ],
            out_specs=pl.BlockSpec((b_tile, graph, embed), lambda b: (b, 0, 0)),
            compiler_params=pltpu.CompilerParams(
                dimension_semantics=("parallel",),
                vmem_limit_bytes=_VMEM_LIMIT_BYTES),
            cost_estimate=cost,
        )(x_in, w1, b1_2d, w2, b2_2d)

    try:
        out = run(True)
    except Exception:
        # pl.Buffered(1) not supported by this jax/Mosaic version — fall back
        # to default double-buffering (weights are small, so this only costs a
        # few KiB of VMEM).
        out = run(False)

    return out[:batch] if batch_pad != batch else out


def ff_and_norm_ref(x, w1, b1, w2, b2, eps=1e-5):
    """Pure-JAX reference mirroring the PyTorch forward."""
    h = jnp.maximum(x @ w1 + b1, 0.0)
    y = h @ w2 + b2 + x
    mean = jnp.mean(y, axis=(1, 2), keepdims=True)
    var = jnp.var(y, axis=(1, 2), keepdims=True, ddof=1)   # unbiased, as torch
    return (y - mean) / jnp.sqrt(var + eps)


if __name__ == "__main__":
    # Small shapes consistent with the module:
    #   embed_dim=32, feed_forward_hidden=64, normalization='layer'
    #   (n_heads is an unused constructor arg in FFandNormsubLayer).
    # batch=5 deliberately exercises the batch-tile tail-padding path
    # (B_TILE=2 -> 3 grid steps over a padded batch of 6).
    batch = 5
    graph_size = 8
    embed_dim = 32
    feed_forward_hidden = 64

    key = jax.random.PRNGKey(0)
    k_x, k_w1, k_b1, k_w2, k_b2 = jax.random.split(key, 5)

    x = jax.random.normal(k_x, (batch, graph_size, embed_dim),
                          dtype=jnp.float32)
    # Parameters stored pre-transposed as (in, out), i.e. torch weight.T.
    w1 = jax.random.uniform(k_w1, (embed_dim, feed_forward_hidden),
                            dtype=jnp.float32, minval=-0.1, maxval=0.1)
    b1 = jax.random.uniform(k_b1, (feed_forward_hidden,),
                            dtype=jnp.float32, minval=-0.1, maxval=0.1)
    w2 = jax.random.uniform(k_w2, (feed_forward_hidden, embed_dim),
                            dtype=jnp.float32, minval=-0.1, maxval=0.1)
    b2 = jax.random.uniform(k_b2, (embed_dim,),
                            dtype=jnp.float32, minval=-0.1, maxval=0.1)

    out = jax.block_until_ready(ff_and_norm(x, w1, b1, w2, b2))
    ref = ff_and_norm_ref(x, w1, b1, w2, b2)

    assert out.shape == (batch, graph_size, embed_dim), out.shape
    assert jnp.allclose(out, ref, atol=1e-4, rtol=1e-4), (
        float(jnp.max(jnp.abs(out - ref))))

    print("KERNEL_OK")
</pallas_src>

<mosaic_0001>
module attributes {stable_mosaic.version = 11 : i64} {
  func.func @_ff_norm_kernel(%arg0: i32, %arg1: memref<2x8x32xf32, #tpu.memory_space<vmem>>, %arg2: memref<32x64xf32, #tpu.memory_space<vmem>>, %arg3: memref<1x64xf32, #tpu.memory_space<vmem>>, %arg4: memref<64x32xf32, #tpu.memory_space<vmem>>, %arg5: memref<1x32xf32, #tpu.memory_space<vmem>>, %arg6: memref<2x8x32xf32, #tpu.memory_space<vmem>>) attributes {dimension_semantics = [#tpu.dimension_semantics<parallel>], iteration_bounds = array<i64: 3>, scalar_prefetch = 0 : i64, scratch_operands = 0 : i64, tpu.core_type = #tpu.core_type<tc>, window_params = [{transform_indices = @transform_0, window_bounds = array<i64: 2, 8, 32>}, {pipeline_mode = #tpu.pipeline_mode<synchronous>, transform_indices = @transform_1, window_bounds = array<i64: 32, 64>}, {pipeline_mode = #tpu.pipeline_mode<synchronous>, transform_indices = @transform_2, window_bounds = array<i64: 1, 64>}, {pipeline_mode = #tpu.pipeline_mode<synchronous>, transform_indices = @transform_3, window_bounds = array<i64: 64, 32>}, {pipeline_mode = #tpu.pipeline_mode<synchronous>, transform_indices = @transform_4, window_bounds = array<i64: 1, 32>}, {transform_indices = @transform_5, window_bounds = array<i64: 2, 8, 32>}]} {
    %c0 = arith.constant 0 : index
    %c0_0 = arith.constant 0 : index
    %c0_1 = arith.constant 0 : index
    %0 = vector.load %arg1[%c0, %c0_0, %c0_1] : memref<2x8x32xf32, #tpu.memory_space<vmem>>, vector<2x8x32xf32>
    %1 = vector.shape_cast %0 : vector<2x8x32xf32> to vector<16x32xf32>
    %c0_2 = arith.constant 0 : index
    %c0_3 = arith.constant 0 : index
    %2 = vector.load %arg2[%c0_2, %c0_3] : memref<32x64xf32, #tpu.memory_space<vmem>>, vector<32x64xf32>
    %cst = arith.constant dense<0.000000e+00> : vector<16x64xf32>
    %3 = tpu.matmul %1, %2, %cst {dimension_numbers = #tpu.dot_dimension_numbers<[1], [0], [0], [1], [0, 0, 1, 1], [], []>} : vector<16x32xf32>, vector<32x64xf32>, vector<16x64xf32> -> vector<16x64xf32>
    %c0_4 = arith.constant 0 : index
    %c0_5 = arith.constant 0 : index
    %4 = vector.load %arg3[%c0_4, %c0_5] : memref<1x64xf32, #tpu.memory_space<vmem>>, vector<1x64xf32>
    %5 = vector.broadcast %4 : vector<1x64xf32> to vector<16x64xf32>
    %6 = arith.addf %3, %5 : vector<16x64xf32>
    %cst_6 = arith.constant 0.000000e+00 : f32
    %7 = vector.broadcast %cst_6 : f32 to vector<16x64xf32>
    %8 = arith.maximumf %6, %7 : vector<16x64xf32>
    %c0_7 = arith.constant 0 : index
    %c0_8 = arith.constant 0 : index
    %9 = vector.load %arg4[%c0_7, %c0_8] : memref<64x32xf32, #tpu.memory_space<vmem>>, vector<64x32xf32>
    %cst_9 = arith.constant dense<0.000000e+00> : vector<16x32xf32>
    %10 = tpu.matmul %8, %9, %cst_9 {dimension_numbers = #tpu.dot_dimension_numbers<[1], [0], [0], [1], [0, 0, 1, 1], [], []>} : vector<16x64xf32>, vector<64x32xf32>, vector<16x32xf32> -> vector<16x32xf32>
    %c0_10 = arith.constant 0 : index
    %c0_11 = arith.constant 0 : index
    %11 = vector.load %arg5[%c0_10, %c0_11] : memref<1x32xf32, #tpu.memory_space<vmem>>, vector<1x32xf32>
    %12 = vector.broadcast %11 : vector<1x32xf32> to vector<16x32xf32>
    %13 = arith.addf %10, %12 : vector<16x32xf32>
    %14 = arith.addf %13, %1 : vector<16x32xf32>
    %15 = vector.shape_cast %14 : vector<16x32xf32> to vector<2x8x32xf32>
    %cst_12 = arith.constant dense<0.000000e+00> : vector<2x8xf32>
    %16 = vector.multi_reduction <add>, %15, %cst_12 [2] : vector<2x8x32xf32> to vector<2x8xf32>
    %17 = vector.shape_cast %16 : vector<2x8xf32> to vector<2x8x1xf32>
    %cst_13 = arith.constant 3.200000e+01 : f32
    %18 = vector.broadcast %cst_13 : f32 to vector<2x8x1xf32>
    %19 = arith.divf %17, %18 : vector<2x8x1xf32>
    %cst_14 = arith.constant dense<0.000000e+00> : vector<2x1xf32>
    %20 = vector.multi_reduction <add>, %19, %cst_14 [1] : vector<2x8x1xf32> to vector<2x1xf32>
    %21 = vector.shape_cast %20 : vector<2x1xf32> to vector<2x1x1xf32>
    %cst_15 = arith.constant 8.000000e+00 : f32
    %22 = vector.broadcast %cst_15 : f32 to vector<2x1x1xf32>
    %23 = arith.divf %21, %22 : vector<2x1x1xf32>
    %24 = vector.broadcast %23 : vector<2x1x1xf32> to vector<2x8x32xf32>
    %25 = arith.subf %15, %24 : vector<2x8x32xf32>
    %26 = arith.mulf %25, %25 : vector<2x8x32xf32>
    %cst_16 = arith.constant dense<0.000000e+00> : vector<2x8xf32>
    %27 = vector.multi_reduction <add>, %26, %cst_16 [2] : vector<2x8x32xf32> to vector<2x8xf32>
    %28 = vector.shape_cast %27 : vector<2x8xf32> to vector<2x8x1xf32>
    %cst_17 = arith.constant dense<0.000000e+00> : vector<2x1xf32>
    %29 = vector.multi_reduction <add>, %28, %cst_17 [1] : vector<2x8x1xf32> to vector<2x1xf32>
    %30 = vector.shape_cast %29 : vector<2x1xf32> to vector<2x1x1xf32>
    %cst_18 = arith.constant 0.00392156886 : f32
    %31 = vector.broadcast %cst_18 : f32 to vector<2x1x1xf32>
    %32 = arith.mulf %30, %31 : vector<2x1x1xf32>
    %cst_19 = arith.constant 9.99999974E-6 : f32
    %33 = vector.broadcast %cst_19 : f32 to vector<2x1x1xf32>
    %34 = arith.addf %32, %33 : vector<2x1x1xf32>
    %35 = math.rsqrt %34 : vector<2x1x1xf32>
    %36 = vector.broadcast %35 : vector<2x1x1xf32> to vector<2x8x32xf32>
    %37 = arith.mulf %25, %36 : vector<2x8x32xf32>
    %c0_20 = arith.constant 0 : index
    %c0_21 = arith.constant 0 : index
    %c0_22 = arith.constant 0 : index
    %38 = vector.load %arg6[%c0_20, %c0_21, %c0_22] : memref<2x8x32xf32, #tpu.memory_space<vmem>>, vector<2x8x32xf32>
    tpu.vector_store %arg6[%c0_20, %c0_21, %c0_22], %37 {strides = array<i32>} : memref<2x8x32xf32, #tpu.memory_space<vmem>>, vector<2x8x32xf32>,
    return
  }
  func.func @transform_0(%arg0: i32) -> (i32, i32, i32) {
    %c0_i32 = arith.constant 0 : i32
    %c0_i32_0 = arith.constant 0 : i32
    %c0_i32_1 = arith.constant 0 : i32
    return %arg0, %c0_i32, %c0_i32_0 : i32, i32, i32
  }
  func.func @transform_1(%arg0: i32) -> (i32, i32) {
    %c0_i32 = arith.constant 0 : i32
    %c0_i32_0 = arith.constant 0 : i32
    %c0_i32_1 = arith.constant 0 : i32
    return %c0_i32, %c0_i32_0 : i32, i32
  }
  func.func @transform_2(%arg0: i32) -> (i32, i32) {
    %c0_i32 = arith.constant 0 : i32
    %c0_i32_0 = arith.constant 0 : i32
    %c0_i32_1 = arith.constant 0 : i32
    return %c0_i32, %c0_i32_0 : i32, i32
  }
  func.func @transform_3(%arg0: i32) -> (i32, i32) {
    %c0_i32 = arith.constant 0 : i32
    %c0_i32_0 = arith.constant 0 : i32
    %c0_i32_1 = arith.constant 0 : i32
    return %c0_i32, %c0_i32_0 : i32, i32
  }
  func.func @transform_4(%arg0: i32) -> (i32, i32) {
    %c0_i32 = arith.constant 0 : i32
    %c0_i32_0 = arith.constant 0 : i32
    %c0_i32_1 = arith.constant 0 : i32
    return %c0_i32, %c0_i32_0 : i32, i32
  }
  func.func @transform_5(%arg0: i32) -> (i32, i32, i32) {
    %c0_i32 = arith.constant 0 : i32
    %c0_i32_0 = arith.constant 0 : i32
    %c0_i32_1 = arith.constant 0 : i32
    return %arg0, %c0_i32, %c0_i32_0 : i32, i32, i32
  }
}

module attributes {stable_mosaic.version = 11 : i64} {
  func.func @_ff_norm_kernel(%arg0: i32, %arg1: memref<2x8x32xf32, #tpu.memory_space<vmem>>, %arg2: memref<32x64xf32, #tpu.memory_space<vmem>>, %arg3: memref<1x64xf32, #tpu.memory_space<vmem>>, %arg4: memref<64x32xf32, #tpu.memory_space<vmem>>, %arg5: memref<1x32xf32, #tpu.memory_space<vmem>>, %arg6: memref<2x8x32xf32, #tpu.memory_space<vmem>>) attributes {dimension_semantics = [#tpu.dimension_semantics<parallel>], iteration_bounds = array<i64: 3>, scalar_prefetch = 0 : i64, scratch_operands = 0 : i64, tpu.core_type = #tpu.core_type<tc>, window_params = [{transform_indices = @transform_0, window_bounds = array<i64: 2, 8, 32>}, {pipeline_mode = #tpu.pipeline_mode<synchronous>, transform_indices = @transform_1, window_bounds = array<i64: 32, 64>}, {pipeline_mode = #tpu.pipeline_mode<synchronous>, transform_indices = @transform_2, window_bounds = array<i64: 1, 64>}, {pipeline_mode = #tpu.pipeline_mode<synchronous>, transform_indices = @transform_3, window_bounds = array<i64: 64, 32>}, {pipeline_mode = #tpu.pipeline_mode<synchronous>, transform_indices = @transform_4, window_bounds = array<i64: 1, 32>}, {transform_indices = @transform_5, window_bounds = array<i64: 2, 8, 32>}]} {
    %c0 = arith.constant 0 : index
    %c0_0 = arith.constant 0 : index
    %c0_1 = arith.constant 0 : index
    %0 = vector.load %arg1[%c0, %c0_0, %c0_1] : memref<2x8x32xf32, #tpu.memory_space<vmem>>, vector<2x8x32xf32>
    %1 = vector.shape_cast %0 : vector<2x8x32xf32> to vector<16x32xf32>
    %c0_2 = arith.constant 0 : index
    %c0_3 = arith.constant 0 : index
    %2 = vector.load %arg2[%c0_2, %c0_3] : memref<32x64xf32, #tpu.memory_space<vmem>>, vector<32x64xf32>
    %cst = arith.constant dense<0.000000e+00> : vector<16x64xf32>
    %3 = tpu.matmul %1, %2, %cst {dimension_numbers = #tpu.dot_dimension_numbers<[1], [0], [0], [1], [0, 0, 1, 1], [], []>} : vector<16x32xf32>, vector<32x64xf32>, vector<16x64xf32> -> vector<16x64xf32>
    %c0_4 = arith.constant 0 : index
    %c0_5 = arith.constant 0 : index
    %4 = vector.load %arg3[%c0_4, %c0_5] : memref<1x64xf32, #tpu.memory_space<vmem>>, vector<1x64xf32>
    %5 = vector.broadcast %4 : vector<1x64xf32> to vector<16x64xf32>
    %6 = arith.addf %3, %5 : vector<16x64xf32>
    %cst_6 = arith.constant 0.000000e+00 : f32
    %7 = vector.broadcast %cst_6 : f32 to vector<16x64xf32>
    %8 = arith.maximumf %6, %7 : vector<16x64xf32>
    %c0_7 = arith.constant 0 : index
    %c0_8 = arith.constant 0 : index
    %9 = vector.load %arg4[%c0_7, %c0_8] : memref<64x32xf32, #tpu.memory_space<vmem>>, vector<64x32xf32>
    %cst_9 = arith.constant dense<0.000000e+00> : vector<16x32xf32>
    %10 = tpu.matmul %8, %9, %cst_9 {dimension_numbers = #tpu.dot_dimension_numbers<[1], [0], [0], [1], [0, 0, 1, 1], [], []>} : vector<16x64xf32>, vector<64x32xf32>, vector<16x32xf32> -> vector<16x32xf32>
    %c0_10 = arith.constant 0 : index
    %c0_11 = arith.constant 0 : index
    %11 = vector.load %arg5[%c0_10, %c0_11] : memref<1x32xf32, #tpu.memory_space<vmem>>, vector<1x32xf32>
    %12 = vector.broadcast %11 : vector<1x32xf32> to vector<16x32xf32>
    %13 = arith.addf %10, %12 : vector<16x32xf32>
    %14 = arith.addf %13, %1 : vector<16x32xf32>
    %15 = vector.shape_cast %14 : vector<16x32xf32> to vector<2x8x32xf32>
    %cst_12 = arith.constant dense<0.000000e+00> : vector<2x8xf32>
    %16 = vector.multi_reduction <add>, %15, %cst_12 [2] : vector<2x8x32xf32> to vector<2x8xf32>
    %17 = vector.shape_cast %16 : vector<2x8xf32> to vector<2x8x1xf32>
    %cst_13 = arith.constant 3.200000e+01 : f32
    %18 = vector.broadcast %cst_13 : f32 to vector<2x8x1xf32>
    %19 = arith.divf %17, %18 : vector<2x8x1xf32>
    %cst_14 = arith.constant dense<0.000000e+00> : vector<2x1xf32>
    %20 = vector.multi_reduction <add>, %19, %cst_14 [1] : vector<2x8x1xf32> to vector<2x1xf32>
    %21 = vector.shape_cast %20 : vector<2x1xf32> to vector<2x1x1xf32>
    %cst_15 = arith.constant 8.000000e+00 : f32
    %22 = vector.broadcast %cst_15 : f32 to vector<2x1x1xf32>
    %23 = arith.divf %21, %22 : vector<2x1x1xf32>
    %24 = vector.broadcast %23 : vector<2x1x1xf32> to vector<2x8x32xf32>
    %25 = arith.subf %15, %24 : vector<2x8x32xf32>
    %26 = arith.mulf %25, %25 : vector<2x8x32xf32>
    %cst_16 = arith.constant dense<0.000000e+00> : vector<2x8xf32>
    %27 = vector.multi_reduction <add>, %26, %cst_16 [2] : vector<2x8x32xf32> to vector<2x8xf32>
    %28 = vector.shape_cast %27 : vector<2x8xf32> to vector<2x8x1xf32>
    %cst_17 = arith.constant dense<0.000000e+00> : vector<2x1xf32>
    %29 = vector.multi_reduction <add>, %28, %cst_17 [1] : vector<2x8x1xf32> to vector<2x1xf32>
    %30 = vector.shape_cast %29 : vector<2x1xf32> to vector<2x1x1xf32>
    %cst_18 = arith.constant 0.00392156886 : f32
    %31 = vector.broadcast %cst_18 : f32 to vector<2x1x1xf32>
    %32 = arith.mulf %30, %31 : vector<2x1x1xf32>
    %cst_19 = arith.constant 9.99999974E-6 : f32
    %33 = vector.broadcast %cst_19 : f32 to vector<2x1x1xf32>
    %34 = arith.addf %32, %33 : vector<2x1x1xf32>
    %35 = math.rsqrt %34 : vector<2x1x1xf32>
    %36 = vector.broadcast %35 : vector<2x1x1xf32> to vector<2x8x32xf32>
    %37 = arith.mulf %25, %36 : vector<2x8x32xf32>
    %c0_20 = arith.constant 0 : index
    %c0_21 = arith.constant 0 : index
    %c0_22 = arith.constant 0 : index
    %38 = vector.load %arg6[%c0_20, %c0_21, %c0_22] : memref<2x8x32xf32, #tpu.memory_space<vmem>>, vector<2x8x32xf32>
    tpu.vector_store %arg6[%c0_20, %c0_21, %c0_22], %37 {strides = array<i32>} : memref<2x8x32xf32, #tpu.memory_space<vmem>>, vector<2x8x32xf32>,
    return
  }
  func.func @transform_0(%arg0: i32) -> (i32, i32, i32) {
    %c0_i32 = arith.constant 0 : i32
    %c0_i32_0 = arith.constant 0 : i32
    %c0_i32_1 = arith.constant 0 : i32
    return %arg0, %c0_i32, %c0_i32_0 : i32, i32, i32
  }
  func.func @transform_1(%arg0: i32) -> (i32, i32) {
    %c0_i32 = arith.constant 0 : i32
    %c0_i32_0 = arith.constant 0 : i32
    %c0_i32_1 = arith.constant 0 : i32
    return %c0_i32, %c0_i32_0 : i32, i32
  }
  func.func @transform_2(%arg0: i32) -> (i32, i32) {
    %c0_i32 = arith.constant 0 : i32
    %c0_i32_0 = arith.constant 0 : i32
    %c0_i32_1 = arith.constant 0 : i32
    return %c0_i32, %c0_i32_0 : i32, i32
  }
  func.func @transform_3(%arg0: i32) -> (i32, i32) {
    %c0_i32 = arith.constant 0 : i32
    %c0_i32_0 = arith.constant 0 : i32
    %c0_i32_1 = arith.constant 0 : i32
    return %c0_i32, %c0_i32_0 : i32, i32
  }
  func.func @transform_4(%arg0: i32) -> (i32, i32) {
    %c0_i32 = arith.constant 0 : i32
    %c0_i32_0 = arith.constant 0 : i32
    %c0_i32_1 = arith.constant 0 : i32
    return %c0_i32, %c0_i32_0 : i32, i32
  }
  func.func @transform_5(%arg0: i32) -> (i32, i32, i32) {
    %c0_i32 = arith.constant 0 : i32
    %c0_i32_0 = arith.constant 0 : i32
    %c0_i32_1 = arith.constant 0 : i32
    return %arg0, %c0_i32, %c0_i32_0 : i32, i32, i32
  }
}

</mosaic_0001>

<bundles_post_ra>
// kernel: tpu_custom_call.1
= control target key start
LH: loop header
LB: loop body
LE: loop exit
PB: predicated region body
PF: predicated region fallthrough
CT: control target
= control target key end

     0   :  { %10 = vsyncpa [#allocation3], 0  ;;  %s937_s0 = inlined_call_operand.vmem [shape: f32[6,8,32], index: 0, kind: input, shape index: {}]   ;;  %s938_s1 = inlined_call_operand.vmem [shape: f32[32,64], index: 1, kind: input, shape index: {}]   ;;  %s939_s2 = inlined_call_operand.vmem [shape: f32[1,64], index: 2, kind: input, shape index: {}]   ;;  %s940_s3 = inlined_call_operand.vmem [shape: f32[64,32], index: 3, kind: input, shape index: {}]   ;;  %s941_s4 = inlined_call_operand.vmem [shape: f32[1,32], index: 4, kind: input, shape index: {}]   ;;  %s942_s5 = inlined_call_operand.hbm [shape: f32[6,8,32], index: 5, kind: output, shape index: {}]  }
   0x1   :  { %12 = vsyncpa [#allocation3 + $0x1], 0  ;;  %s785_s18 = smov 0   ;;  %s787_s19 = smov 0  }
   0x2   :  { %s789_s20 = smov 0   ;;  %s791_s21 = smov 0  }
   0x3 LB: > { %s806_s22 = sadd.s32 4294967295, %s750_s21   ;;  %s554_s23 = sadd.s32 4294967294, %s750_s21   ;;  %s750_s21 = sphi %s791_s21, %s948_s21   ;;  %s746_s20 = sphi %s789_s20, %s947_s20   ;;  %s742_s19 = sphi %s787_s19, %s946_s19   ;;  %s738_s18 = sphi %s785_s18, %s945_s18  }
   0x4   : > { %s810_s24 = sadd.s32 1, %s750_s21   ;;  %s135_s25 = sadd.s32 1, %s746_s20 }
   0x5   : > { %s132_s26 = ssub.s32 %s750_s21, %s810_s24  ;;  %p145_p0 = scmp.ne.s32.totalorder %s746_s20, %s742_s19 }
   0x6   : > { %p133_p1 = scmp.eq.s32.totalorder %s132_s26, 0  ;;  %p146_p2 = scmp.eq.s32.totalorder %s806_s22, 2 }
   0x7   : > { %p151_p3 = scmp.ne.s32.totalorder %s742_s19, %s738_s18  ;;  %p152_p4 = scmp.eq.s32.totalorder %s554_s23, 2 }
   0x8   : > { %s821_s27 = scalar_select %p133_p1, %s746_s20, %s135_s25  }
   0x9   : > { %p823_p5 = por %p146_p2, %p145_p0  ;;  %p827_p6 = por %p152_p4, %p151_p3 }
   0xa   : > { %p557_p7 = scmp.ge.s32.totalorder %s750_s21, 1  ;;  %p191_p8 = scmp.lt.s32.totalorder %s750_s21, 4 }
   0xc   : > { %p192_p9 = pnand %p557_p7, %p191_p8 }
   0xd   : > { %v228_v0 = vld [vmem:[%s938_s1] sm:$0xff] (!%p192_p9)  ;;  %v229_v1 = vld [vmem:[%s938_s1 + $0x8] sm:$0xff] (!%p192_p9)  ;;  %v230_v2 = vld [vmem:[%s938_s1 + $0x10] sm:$0xff] (!%p192_p9)  ;;  %s559_s11 = sshll.u32 (!%p192_p9), %s806_s22, 1  ;;  %vm239_vm0 = vcmask (!%p192_p9), 261120   ;;  %vm338_vm1 = vcmask (!%p192_p9), 523264  }
   0xe   : > { %195 = sbr.rel (%p192_p9) target bundleno = 815 (0x32f), region = 40  ;;  %v619_v3 = vpack.c.bf16 (!%p192_p9), %v229_v1, %v228_v0  ;;  %v231_v4 = vld [vmem:[%s938_s1 + $0x18] sm:$0xff] (!%p192_p9)  ;;  %p220_p10 = scmp.lt.s32.totalorder (!%p192_p9), %s559_s11, 5  ;;  %v323_v5 = vld [vmem:[%s940_s3] sm:$0xff] (!%p192_p9)  ;;  %v324_v6 = vld [vmem:[%s940_s3 + $0x8] sm:$0xff] (!%p192_p9) }
   0xf   : > { %v623_v7 = vpack.c.bf16 (!%p192_p9), %v231_v4, %v230_v2  ;;  %v627_v8 = vpack.c.bf16 (!%p192_p9), %v324_v6, %v323_v5  ;;  %v325_v9 = vld [vmem:[%s940_s3 + $0x10] sm:$0xff] (!%p192_p9)  ;;  %v326_v10 = vld [vmem:[%s940_s3 + $0x18] sm:$0xff] (!%p192_p9)  ;;  %v327_v12 = vld [vmem:[%s940_s3 + $0x20] sm:$0xff] (!%p192_p9)  ;;  %s216_s6 = sand.u32 (!%p192_p9), 1, %s742_s19   ;;  %s572_s8 = sshll.u32 (!%p192_p9), %s806_s22, 8 }
  0x10   : > { %620 = vmatprep.subr.bf16.mxu0 (!%p192_p9), %v619_v3  ;;  %v631_v11 = vpack.c.bf16 (!%p192_p9), %v326_v10, %v325_v9  ;;  %v328_v13 = vld [vmem:[%s940_s3 + $0x28] sm:$0xff] (!%p192_p9)  ;;  %v329_v17 = vld [vmem:[%s940_s3 + $0x30] sm:$0xff] (!%p192_p9)  ;;  %v330_v18 = vld [vmem:[%s940_s3 + $0x38] sm:$0xff] (!%p192_p9)  ;;  %s558_s7 = sshll.u32 (!%p192_p9), %s216_s6, 4  ;;  %s896_s15 = scalar_lea.sflag (!%p192_p9), [#allocation3], %s216_s6 }
  0x11   : > { %622 = vmatpush3.bf16.msra.mxu0 (!%p192_p9), %v619_v3  ;;  %628 = vmatprep.subr.bf16.mxu1 (!%p192_p9), %v627_v8  ;;  %v635_v14 = vpack.c.bf16 (!%p192_p9), %v328_v13, %v327_v12  ;;  %v639_v19 = vpack.c.bf16 (!%p192_p9), %v330_v18, %v329_v17  ;;  %v561_v20 = vld [vmem:[%s939_s2] ss:$0 sm:$0xff] (!%p192_p9)  ;;  %s218_s9 = scalar_lea.vmem (!%p192_p9), [#allocation2], %s558_s7 }
  0x12   : > { %624 = vmatprep.subr.bf16.mxu0 (!%p192_p9), %v623_v7  ;;  %630 = vmatpush3.bf16.msra.mxu1 (!%p192_p9), %v627_v8  ;;  %v564_v27 = vld [vmem:[%s941_s4] ss:$0 sm:$0xff] (!%p192_p9) }
  0x13   : > { %632 = vmatprep.subr.bf16.mxu1 (!%p192_p9), %v631_v11 }
  0x15   : > { %s950_s11 = smov (!%p220_p10, %s559_s11), 5  ;;  %626 = vmatpush3.bf16.msra.mxu0 %v623_v7 }
  0x16   : > { %s560_s10 = sshll.u32 %s950_s11, 3  ;;  %634 = vmatpush3.bf16.msra.mxu1 %v631_v11  ;;  %s752_s11 = smov [#allocation2]  }
  0x17   : > { %s223_s14 = scalar_lea.vmem %s937_s0, %s560_s10  ;;  %636 = vmatprep.subr.bf16.mxu1 %v635_v14  ;;  %s492_s10 = sshll.u32 %s218_s9, 4  ;;  %s893_s10 = int_to_ptr.vmem [resolvable:$true] %s492_s10 }
  0x18   : > { %v226_v15 = vld [vmem:[%s223_s14] sm:$0xff]  ;;  %v227_v16 = vld [vmem:[%s223_s14 + $0x8] sm:$0xff]  ;;  %s891_s14 = scalar_lea.hbm %s942_s5, %s572_s8  ;;  %s688_s22 = scalar_lea.vmem %s893_s10, 256 }
  0x19   : > { %597 = vmatprep.mubr.msk.f32.mxu0 %vm239_vm0, %v226_v15  ;;  %p689_p11 = scmp.ne.s32.totalorder %s893_s10, %s688_s22  ;;  %s692_s16 = sshll.u32 %s752_s11, 4  ;;  %s693_s16 = int_to_ptr.vmem [resolvable:$false] %s692_s16 }
  0x1a   : > { %598 = vmatmul.mubr.msk.f32.vlgmr.msra.gmra.mrb[0].mxu0 %vm239_vm0, %v227_v16  ;;  %638 = vmatpush3.bf16.msra.mxu1 %v635_v14  ;;  %s694_s17 = scalar_lea.vmem %s693_s16, 512  ;;  %p695_p0 = scmp.lt.s32.totalorder %s893_s10, %s693_s16 }
  0x1b   : > { %640 = vmatprep.subr.bf16.mxu1 %v639_v19  ;;  %p690_p12 = pnand %p689_p11, %p823_p5  ;;  %p696_p1 = scmp.lt.s32.totalorder %s694_s17, %s688_s22 }
  0x1d   : > { %p691_p13 = pneg %p690_p12  ;;  %p697_p2 = por %p696_p1, %p695_p0 }
  0x1e   : > { %642 = vmatpush3.bf16.msra.mxu1 %v639_v19 }
  0x1f   : > { %p698_p3 = pnand %p697_p2, %p691_p13 }
  0xed   : > { %v599_v21 = vpop.f32.mrb[0].mxu0 }
  0xee   : > { %v318_v22 = vadd.f32 %v599_v21, %v561_v20  ;;  %v312_v23 = vpop.f32.mrb[1].mxu0 }
  0xef   : > { %v313_v24 = vadd.f32 %v561_v20, %v312_v23 }
  0xf0   : > { %v322_v26 = vmax.f32 %v318_v22, 0.0 }
  0xf1   : > { %v321_v25 = vmax.f32 %v313_v24, 0.0 }
  0xf3   : > { %616 = vmatprep.mubr.msk.f32.mxu1 %vm338_vm1, %v321_v25 }
  0xf4   : > { %617 = vmatmul.mubr.msk.f32.vlgmr.msra.gmra.mrb[0].mxu1 %vm338_vm1, %v322_v26 }
 0x1c7   : > { %v618_v28 = vpop.f32.mrb[0].mxu1 }
 0x1c8   : > { %v411_v29 = vpop.f32.mrb[1].mxu1  ;;  %v417_v30 = vadd.f32 %v618_v28, %v564_v27 }
 0x1c9   : > { %v412_v31 = vadd.f32 %v564_v27, %v411_v29 }
 0x1ca   : > { %v421_v34 = vadd.f32 %v417_v30, %v227_v16 }
 0x1cb   : > { %v420_v32 = vadd.f32 %v412_v31, %v226_v15 }
 0x1cc   : > { %v425_v35 = vsel %vm239_vm0, %v421_v34, 0.0 }
 0x1cd   : > { %v422_v33 = vsel %vm239_vm0, %v420_v32, 0.0 }
 0x1ce   : > { %423 = vadd.xlane.f32.xlu0 %v422_v33 }
 0x1d2   : > { %426 = vadd.xlane.f32.xlu0 %v425_v35 }
 0x25b   : > { %v424_v36 = vpop.xlane.xlu0 %423 }
 0x25c   : > { %v429_v37 = vmul.f32 0.03125, %v424_v36 }
 0x25e   : > { %v431_v38 = vrot.slane %v429_v37, 4 }
 0x25f   : > { %v427_v39 = vpop.xlane.xlu0 %426 }
 0x260   : > { %v432_v40 = vadd.f32 %v431_v38, %v429_v37  ;;  %v430_v41 = vmul.f32 0.03125, %v427_v39 }
 0x262   : > { %v433_v42 = vrot.slane %v432_v40, 2  ;;  %v437_v43 = vrot.slane %v430_v41, 4 }
 0x264   : > { %v434_v44 = vadd.f32 %v433_v42, %v432_v40  ;;  %v438_v45 = vadd.f32 %v437_v43, %v430_v41 }
 0x266   : > { %v435_v46 = vrot.slane %v434_v44, 1  ;;  %v439_v47 = vrot.slane %v438_v45, 2 }
 0x268   : > { %v440_v48 = vadd.f32 %v439_v47, %v438_v45  ;;  %v436_v49 = vadd.f32 %v435_v46, %v434_v44 }
 0x26a   : > { %v441_v50 = vrot.slane %v440_v48, 1  ;;  %v444_v51 = vmul.f32 0.125, %v436_v49 }
 0x26c   : > { %v442_v52 = vadd.f32 %v441_v50, %v440_v48  ;;  %v446_v53 = vsub.f32 %v420_v32, %v444_v51 }
 0x26e   : > { %v445_v54 = vmul.f32 0.125, %v442_v52  ;;  %v448_v55 = vmul.f32 %v446_v53, %v446_v53 }
 0x270   : > { %v450_v56 = vsel %vm239_vm0, %v448_v55, 0.0  ;;  %v447_v57 = vsub.f32 %v421_v34, %v445_v54 }
 0x271   : > { %451 = vadd.xlane.f32.xlu1 %v450_v56 }
 0x272   : > { %v449_v58 = vmul.f32 %v447_v57, %v447_v57 }
 0x274   : > { %v453_v59 = vsel %vm239_vm0, %v449_v58, 0.0 }
 0x275   : > { %454 = vadd.xlane.f32.xlu1 %v453_v59 }
 0x2fe   : > { %v452_v60 = vpop.xlane.xlu1 %451 }
 0x2ff   : > { %v456_v61 = vrot.slane %v452_v60, 4 }
 0x301   : > { %v457_v62 = vadd.f32 %v456_v61, %v452_v60 }
 0x302   : > { %v455_v63 = vpop.xlane.xlu1 %454 }
 0x303   : > { %v458_v0 = vrot.slane %v457_v62, 2  ;;  %v462_v1 = vrot.slane %v455_v63, 4 }
 0x305   : > { %v459_v2 = vadd.f32 %v458_v0, %v457_v62  ;;  %v463_v3 = vadd.f32 %v462_v1, %v455_v63 }
 0x307   : > { %v460_v4 = vrot.slane %v459_v2, 1  ;;  %v464_v5 = vrot.slane %v463_v3, 2 }
 0x309   : > { %v461_v6 = vadd.f32 %v460_v4, %v459_v2  ;;  %v465_v7 = vadd.f32 %v464_v5, %v463_v3 }
 0x30b   : > { %v468_v8 = vmul.f32 0.003921569, %v461_v6  ;;  %v466_v9 = vrot.slane %v465_v7, 1 }
 0x30d   : > { %v470_v10 = vadd.f32 1e-05, %v468_v8  ;;  %v467_v11 = vadd.f32 %v466_v9, %v465_v7 }
 0x30f   : > { %684 = vrsqrt.f32 %v470_v10  ;;  %v469_v12 = vmul.f32 0.003921569, %v467_v11 }
 0x311   : > { %v471_v13 = vadd.f32 1e-05, %v469_v12 }
 0x313   : > { %686 = vrsqrt.f32 %v471_v13 }
 0x319   : > { %v685_v14 = vpop.eup %684 }
 0x31a   : > { %v474_v15 = vmul.f32 %v685_v14, %v446_v53 }
 0x31c   : > { %476 = vst.msk [vmem:[%s218_s9] sm:$0xff] %vm239_vm0, %v474_v15 }
 0x31d   : > { %v687_v16 = vpop.eup %686 }
 0x31e   : > { %v475_v17 = vmul.f32 %v687_v16, %v447_v57 }
 0x320   : > { %477 = vst.msk [vmem:[%s218_s9 + $0x8] sm:$0xff] %vm239_vm0, %v475_v17 }
 0x321   : > { %701 = shalt.err (!%p698_p3)
}
 0x322   : > { %s702_s23 = scalar_lea.hbm %s891_s14, 256  ;;  %s706_s30 = scalar_lea.hbm %s942_s5, 768 }
 0x323   : > { %p703_p4 = scmp.ne.s32.totalorder %s891_s14, %s702_s23  ;;  %p707_p9 = scmp.lt.u32.totalorder %s891_s14, %s942_s5 }
 0x324   : > { %p708_p10 = scmp.lt.u32.totalorder %s706_s30, %s702_s23  ;;  %p710_p12 = scmp.lt.u32.totalorder %s702_s23, %s891_s14 }
 0x325   : > { %p704_p7 = pnand %p703_p4, %p823_p5 }
 0x326   : > { %p709_p11 = por %p708_p10, %p707_p9 }
 0x327   : > { %p705_p8 = pneg %p704_p7 }
 0x328   : > { %p711_p13 = por %p710_p12, %p709_p11 }
 0x32a   : > { %p712_p0 = pnand %p711_p13, %p705_p8 }
 0x32c   : > { %715 = shalt.err (!%p712_p0)
}
 0x32d   : > { %s753_s8 = smov 128   ;;  %s754_s9 = smov 8  }
 0x32e   : > { %643 = dma.vmem_to_hbm [thread:$0]  (%p823_p5), %s893_s10, 256, %s891_s14, %s896_s15, %s753_s8, %s753_s8, %s754_s9  }
 0x32f PF: > { %p649_p1 = scmp.ge.s32.totalorder %s750_s21, 2  ;;  %s507_s12 = sand.u32 1, %s738_s18  }
 0x330   : > { %s508_s13 = scalar_lea.sflag [#allocation3], %s507_s12 }
 0x331   : > { %p646_p2 = pnand %p649_p1, %p827_p6 }
 0x333   : > { %733 = dma.done.wait (!%p646_p2), %s508_s13, 256  }
 0x334   : > { %735 = vsyncadd (!%p646_p2), %s508_s13, 4294967040  ;;  %p15_p3 = scmp.ge.s32.totalorder %s810_s24, 5   ;;  %s945_s18 = smov %s742_s19 }
 0x335   : > { %s946_s19 = smov %s746_s20  ;;  %s947_s20 = smov %s821_s27 }
 0x336   : > { %s948_s21 = smov %s810_s24  ;;  %17 = sbr.rel (!%p15_p3) target bundleno = 3 (0x3), region = 75 }
 0x33d   :  { %513 = vsyncpa [#allocation3], 1 }
 0x33e   :  { %515 = vsyncpa [#allocation3 + $0x1], 1 }

// kernel: tpu_custom_call.1
= control target key start
LH: loop header
LB: loop body
LE: loop exit
PB: predicated region body
PF: predicated region fallthrough
CT: control target
= control target key end

     0   :  { %10 = vsyncpa [#allocation3], 0  ;;  %s937_s0 = inlined_call_operand.vmem [shape: f32[6,8,32], index: 0, kind: input, shape index: {}]   ;;  %s938_s1 = inlined_call_operand.vmem [shape: f32[32,64], index: 1, kind: input, shape index: {}]   ;;  %s939_s2 = inlined_call_operand.vmem [shape: f32[1,64], index: 2, kind: input, shape index: {}]   ;;  %s940_s3 = inlined_call_operand.vmem [shape: f32[64,32], index: 3, kind: input, shape index: {}]   ;;  %s941_s4 = inlined_call_operand.vmem [shape: f32[1,32], index: 4, kind: input, shape index: {}]   ;;  %s942_s5 = inlined_call_operand.hbm [shape: f32[6,8,32], index: 5, kind: output, shape index: {}]  }
   0x1   :  { %12 = vsyncpa [#allocation3 + $0x1], 0  ;;  %s785_s18 = smov 0   ;;  %s787_s19 = smov 0  }
   0x2   :  { %s789_s20 = smov 0   ;;  %s791_s21 = smov 0  }
   0x3 LB: > { %s806_s22 = sadd.s32 4294967295, %s750_s21   ;;  %s554_s23 = sadd.s32 4294967294, %s750_s21   ;;  %s750_s21 = sphi %s791_s21, %s948_s21   ;;  %s746_s20 = sphi %s789_s20, %s947_s20   ;;  %s742_s19 = sphi %s787_s19, %s946_s19   ;;  %s738_s18 = sphi %s785_s18, %s945_s18  }
   0x4   : > { %s810_s24 = sadd.s32 1, %s750_s21   ;;  %s135_s25 = sadd.s32 1, %s746_s20 }
   0x5   : > { %s132_s26 = ssub.s32 %s750_s21, %s810_s24  ;;  %p145_p0 = scmp.ne.s32.totalorder %s746_s20, %s742_s19 }
   0x6   : > { %p133_p1 = scmp.eq.s32.totalorder %s132_s26, 0  ;;  %p146_p2 = scmp.eq.s32.totalorder %s806_s22, 2 }
   0x7   : > { %p151_p3 = scmp.ne.s32.totalorder %s742_s19, %s738_s18  ;;  %p152_p4 = scmp.eq.s32.totalorder %s554_s23, 2 }
   0x8   : > { %s821_s27 = scalar_select %p133_p1, %s746_s20, %s135_s25  }
   0x9   : > { %p823_p5 = por %p146_p2, %p145_p0  ;;  %p827_p6 = por %p152_p4, %p151_p3 }
   0xa   : > { %p557_p7 = scmp.ge.s32.totalorder %s750_s21, 1  ;;  %p191_p8 = scmp.lt.s32.totalorder %s750_s21, 4 }
   0xc   : > { %p192_p9 = pnand %p557_p7, %p191_p8 }
   0xd   : > { %v228_v0 = vld [vmem:[%s938_s1] sm:$0xff] (!%p192_p9)  ;;  %v229_v1 = vld [vmem:[%s938_s1 + $0x8] sm:$0xff] (!%p192_p9)  ;;  %v230_v2 = vld [vmem:[%s938_s1 + $0x10] sm:$0xff] (!%p192_p9)  ;;  %s559_s11 = sshll.u32 (!%p192_p9), %s806_s22, 1  ;;  %vm239_vm0 = vcmask (!%p192_p9), 261120   ;;  %vm338_vm1 = vcmask (!%p192_p9), 523264  }
   0xe   : > { %195 = sbr.rel (%p192_p9) target bundleno = 815 (0x32f), region = 40  ;;  %v619_v3 = vpack.c.bf16 (!%p192_p9), %v229_v1, %v228_v0  ;;  %v231_v4 = vld [vmem:[%s938_s1 + $0x18] sm:$0xff] (!%p192_p9)  ;;  %p220_p10 = scmp.lt.s32.totalorder (!%p192_p9), %s559_s11, 5  ;;  %v323_v5 = vld [vmem:[%s940_s3] sm:$0xff] (!%p192_p9)  ;;  %v324_v6 = vld [vmem:[%s940_s3 + $0x8] sm:$0xff] (!%p192_p9) }
   0xf   : > { %v623_v7 = vpack.c.bf16 (!%p192_p9), %v231_v4, %v230_v2  ;;  %v627_v8 = vpack.c.bf16 (!%p192_p9), %v324_v6, %v323_v5  ;;  %v325_v9 = vld [vmem:[%s940_s3 + $0x10] sm:$0xff] (!%p192_p9)  ;;  %v326_v10 = vld [vmem:[%s940_s3 + $0x18] sm:$0xff] (!%p192_p9)  ;;  %v327_v12 = vld [vmem:[%s940_s3 + $0x20] sm:$0xff] (!%p192_p9)  ;;  %s216_s6 = sand.u32 (!%p192_p9), 1, %s742_s19   ;;  %s572_s8 = sshll.u32 (!%p192_p9), %s806_s22, 8 }
  0x10   : > { %620 = vmatprep.subr.bf16.mxu0 (!%p192_p9), %v619_v3  ;;  %v631_v11 = vpack.c.bf16 (!%p192_p9), %v326_v10, %v325_v9  ;;  %v328_v13 = vld [vmem:[%s940_s3 + $0x28] sm:$0xff] (!%p192_p9)  ;;  %v329_v17 = vld [vmem:[%s940_s3 + $0x30] sm:$0xff] (!%p192_p9)  ;;  %v330_v18 = vld [vmem:[%s940_s3 + $0x38] sm:$0xff] (!%p192_p9)  ;;  %s558_s7 = sshll.u32 (!%p192_p9), %s216_s6, 4  ;;  %s896_s15 = scalar_lea.sflag (!%p192_p9), [#allocation3], %s216_s6 }
  0x11   : > { %622 = vmatpush3.bf16.msra.mxu0 (!%p192_p9), %v619_v3  ;;  %628 = vmatprep.subr.bf16.mxu1 (!%p192_p9), %v627_v8  ;;  %v635_v14 = vpack.c.bf16 (!%p192_p9), %v328_v13, %v327_v12  ;;  %v639_v19 = vpack.c.bf16 (!%p192_p9), %v330_v18, %v329_v17  ;;  %v561_v20 = vld [vmem:[%s939_s2] ss:$0 sm:$0xff] (!%p192_p9)  ;;  %s218_s9 = scalar_lea.vmem (!%p192_p9), [#allocation2], %s558_s7 }
  0x12   : > { %624 = vmatprep.subr.bf16.mxu0 (!%p192_p9), %v623_v7  ;;  %630 = vmatpush3.bf16.msra.mxu1 (!%p192_p9), %v627_v8  ;;  %v564_v27 = vld [vmem:[%s941_s4] ss:$0 sm:$0xff] (!%p192_p9) }
  0x13   : > { %632 = vmatprep.subr.bf16.mxu1 (!%p192_p9), %v631_v11 }
  0x15   : > { %s950_s11 = smov (!%p220_p10, %s559_s11), 5  ;;  %626 = vmatpush3.bf16.msra.mxu0 %v623_v7 }
  0x16   : > { %s560_s10 = sshll.u32 %s950_s11, 3  ;;  %634 = vmatpush3.bf16.msra.mxu1 %v631_v11  ;;  %s752_s11 = smov [#allocation2]  }
  0x17   : > { %s223_s14 = scalar_lea.vmem %s937_s0, %s560_s10  ;;  %636 = vmatprep.subr.bf16.mxu1 %v635_v14  ;;  %s492_s10 = sshll.u32 %s218_s9, 4  ;;  %s893_s10 = int_to_ptr.vmem [resolvable:$true] %s492_s10 }
  0x18   : > { %v226_v15 = vld [vmem:[%s223_s14] sm:$0xff]  ;;  %v227_v16 = vld [vmem:[%s223_s14 + $0x8] sm:$0xff]  ;;  %s891_s14 = scalar_lea.hbm %s942_s5, %s572_s8  ;;  %s688_s22 = scalar_lea.vmem %s893_s10, 256 }
  0x19   : > { %597 = vmatprep.mubr.msk.f32.mxu0 %vm239_vm0, %v226_v15  ;;  %p689_p11 = scmp.ne.s32.totalorder %s893_s10, %s688_s22  ;;  %s692_s16 = sshll.u32 %s752_s11, 4  ;;  %s693_s16 = int_to_ptr.vmem [resolvable:$false] %s692_s16 }
  0x1a   : > { %598 = vmatmul.mubr.msk.f32.vlgmr.msra.gmra.mrb[0].mxu0 %vm239_vm0, %v227_v16  ;;  %638 = vmatpush3.bf16.msra.mxu1 %v635_v14  ;;  %s694_s17 = scalar_lea.vmem %s693_s16, 512  ;;  %p695_p0 = scmp.lt.s32.totalorder %s893_s10, %s693_s16 }
  0x1b   : > { %640 = vmatprep.subr.bf16.mxu1 %v639_v19  ;;  %p690_p12 = pnand %p689_p11, %p823_p5  ;;  %p696_p1 = scmp.lt.s32.totalorder %s694_s17, %s688_s22 }
  0x1d   : > { %p691_p13 = pneg %p690_p12  ;;  %p697_p2 = por %p696_p1, %p695_p0 }
  0x1e   : > { %642 = vmatpush3.bf16.msra.mxu1 %v639_v19 }
  0x1f   : > { %p698_p3 = pnand %p697_p2, %p691_p13 }
  0xed   : > { %v599_v21 = vpop.f32.mrb[0].mxu0 }
  0xee   : > { %v318_v22 = vadd.f32 %v599_v21, %v561_v20  ;;  %v312_v23 = vpop.f32.mrb[1].mxu0 }
  0xef   : > { %v313_v24 = vadd.f32 %v561_v20, %v312_v23 }
  0xf0   : > { %v322_v26 = vmax.f32 %v318_v22, 0.0 }
  0xf1   : > { %v321_v25 = vmax.f32 %v313_v24, 0.0 }
  0xf3   : > { %616 = vmatprep.mubr.msk.f32.mxu1 %vm338_vm1, %v321_v25 }
  0xf4   : > { %617 = vmatmul.mubr.msk.f32.vlgmr.msra.gmra.mrb[0].mxu1 %vm338_vm1, %v322_v26 }
 0x1c7   : > { %v618_v28 = vpop.f32.mrb[0].mxu1 }
 0x1c8   : > { %v411_v29 = vpop.f32.mrb[1].mxu1  ;;  %v417_v30 = vadd.f32 %v618_v28, %v564_v27 }
 0x1c9   : > { %v412_v31 = vadd.f32 %v564_v27, %v411_v29 }
 0x1ca   : > { %v421_v34 = vadd.f32 %v417_v30, %v227_v16 }
 0x1cb   : > { %v420_v32 = vadd.f32 %v412_v31, %v226_v15 }
 0x1cc   : > { %v425_v35 = vsel %vm239_vm0, %v421_v34, 0.0 }
 0x1cd   : > { %v422_v33 = vsel %vm239_vm0, %v420_v32, 0.0 }
 0x1ce   : > { %423 = vadd.xlane.f32.xlu0 %v422_v33 }
 0x1d2   : > { %426 = vadd.xlane.f32.xlu0 %v425_v35 }
 0x25b   : > { %v424_v36 = vpop.xlane.xlu0 %423 }
 0x25c   : > { %v429_v37 = vmul.f32 0.03125, %v424_v36 }
 0x25e   : > { %v431_v38 = vrot.slane %v429_v37, 4 }
 0x25f   : > { %v427_v39 = vpop.xlane.xlu0 %426 }
 0x260   : > { %v432_v40 = vadd.f32 %v431_v38, %v429_v37  ;;  %v430_v41 = vmul.f32 0.03125, %v427_v39 }
 0x262   : > { %v433_v42 = vrot.slane %v432_v40, 2  ;;  %v437_v43 = vrot.slane %v430_v41, 4 }
 0x264   : > { %v434_v44 = vadd.f32 %v433_v42, %v432_v40  ;;  %v438_v45 = vadd.f32 %v437_v43, %v430_v41 }
 0x266   : > { %v435_v46 = vrot.slane %v434_v44, 1  ;;  %v439_v47 = vrot.slane %v438_v45, 2 }
 0x268   : > { %v440_v48 = vadd.f32 %v439_v47, %v438_v45  ;;  %v436_v49 = vadd.f32 %v435_v46, %v434_v44 }
 0x26a   : > { %v441_v50 = vrot.slane %v440_v48, 1  ;;  %v444_v51 = vmul.f32 0.125, %v436_v49 }
 0x26c   : > { %v442_v52 = vadd.f32 %v441_v50, %v440_v48  ;;  %v446_v53 = vsub.f32 %v420_v32, %v444_v51 }
 0x26e   : > { %v445_v54 = vmul.f32 0.125, %v442_v52  ;;  %v448_v55 = vmul.f32 %v446_v53, %v446_v53 }
 0x270   : > { %v450_v56 = vsel %vm239_vm0, %v448_v55, 0.0  ;;  %v447_v57 = vsub.f32 %v421_v34, %v445_v54 }
 0x271   : > { %451 = vadd.xlane.f32.xlu1 %v450_v56 }
 0x272   : > { %v449_v58 = vmul.f32 %v447_v57, %v447_v57 }
 0x274   : > { %v453_v59 = vsel %vm239_vm0, %v449_v58, 0.0 }
 0x275   : > { %454 = vadd.xlane.f32.xlu1 %v453_v59 }
 0x2fe   : > { %v452_v60 = vpop.xlane.xlu1 %451 }
 0x2ff   : > { %v456_v61 = vrot.slane %v452_v60, 4 }
 0x301   : > { %v457_v62 = vadd.f32 %v456_v61, %v452_v60 }
 0x302   : > { %v455_v63 = vpop.xlane.xlu1 %454 }
 0x303   : > { %v458_v0 = vrot.slane %v457_v62, 2  ;;  %v462_v1 = vrot.slane %v455_v63, 4 }
 0x305   : > { %v459_v2 = vadd.f32 %v458_v0, %v457_v62  ;;  %v463_v3 = vadd.f32 %v462_v1, %v455_v63 }
 0x307   : > { %v460_v4 = vrot.slane %v459_v2, 1  ;;  %v464_v5 = vrot.slane %v463_v3, 2 }
 0x309   : > { %v461_v6 = vadd.f32 %v460_v4, %v459_v2  ;;  %v465_v7 = vadd.f32 %v464_v5, %v463_v3 }
 0x30b   : > { %v468_v8 = vmul.f32 0.003921569, %v461_v6  ;;  %v466_v9 = vrot.slane %v465_v7, 1 }
 0x30d   : > { %v470_v10 = vadd.f32 1e-05, %v468_v8  ;;  %v467_v11 = vadd.f32 %v466_v9, %v465_v7 }
 0x30f   : > { %684 = vrsqrt.f32 %v470_v10  ;;  %v469_v12 = vmul.f32 0.003921569, %v467_v11 }
 0x311   : > { %v471_v13 = vadd.f32 1e-05, %v469_v12 }
 0x313   : > { %686 = vrsqrt.f32 %v471_v13 }
 0x319   : > { %v685_v14 = vpop.eup %684 }
 0x31a   : > { %v474_v15 = vmul.f32 %v685_v14, %v446_v53 }
 0x31c   : > { %476 = vst.msk [vmem:[%s218_s9] sm:$0xff] %vm239_vm0, %v474_v15 }
 0x31d   : > { %v687_v16 = vpop.eup %686 }
 0x31e   : > { %v475_v17 = vmul.f32 %v687_v16, %v447_v57 }
 0x320   : > { %477 = vst.msk [vmem:[%s218_s9 + $0x8] sm:$0xff] %vm239_vm0, %v475_v17 }
 0x321   : > { %701 = shalt.err (!%p698_p3)
}
 0x322   : > { %s702_s23 = scalar_lea.hbm %s891_s14, 256  ;;  %s706_s30 = scalar_lea.hbm %s942_s5, 768 }
 0x323   : > { %p703_p4 = scmp.ne.s32.totalorder %s891_s14, %s702_s23  ;;  %p707_p9 = scmp.lt.u32.totalorder %s891_s14, %s942_s5 }
 0x324   : > { %p708_p10 = scmp.lt.u32.totalorder %s706_s30, %s702_s23  ;;  %p710_p12 = scmp.lt.u32.totalorder %s702_s23, %s891_s14 }
 0x325   : > { %p704_p7 = pnand %p703_p4, %p823_p5 }
 0x326   : > { %p709_p11 = por %p708_p10, %p707_p9 }
 0x327   : > { %p705_p8 = pneg %p704_p7 }
 0x328   : > { %p711_p13 = por %p710_p12, %p709_p11 }
 0x32a   : > { %p712_p0 = pnand %p711_p13, %p705_p8 }
 0x32c   : > { %715 = shalt.err (!%p712_p0)
}
 0x32d   : > { %s753_s8 = smov 128   ;;  %s754_s9 = smov 8  }
 0x32e   : > { %643 = dma.vmem_to_hbm [thread:$0]  (%p823_p5), %s893_s10, 256, %s891_s14, %s896_s15, %s753_s8, %s753_s8, %s754_s9  }
 0x32f PF: > { %p649_p1 = scmp.ge.s32.totalorder %s750_s21, 2  ;;  %s507_s12 = sand.u32 1, %s738_s18  }
 0x330   : > { %s508_s13 = scalar_lea.sflag [#allocation3], %s507_s12 }
 0x331   : > { %p646_p2 = pnand %p649_p1, %p827_p6 }
 0x333   : > { %733 = dma.done.wait (!%p646_p2), %s508_s13, 256  }
 0x334   : > { %735 = vsyncadd (!%p646_p2), %s508_s13, 4294967040  ;;  %p15_p3 = scmp.ge.s32.totalorder %s810_s24, 5   ;;  %s945_s18 = smov %s742_s19 }
 0x335   : > { %s946_s19 = smov %s746_s20  ;;  %s947_s20 = smov %s821_s27 }
 0x336   : > { %s948_s21 = smov %s810_s24  ;;  %17 = sbr.rel (!%p15_p3) target bundleno = 3 (0x3), region = 75 }
 0x33d   :  { %513 = vsyncpa [#allocation3], 1 }
 0x33e   :  { %515 = vsyncpa [#allocation3 + $0x1], 1 }

</bundles_post_ra>
